<compile_context>
chip_gen: v7x
topology: tpu7x:2x2x1
jax: 0.10.0
libtpu: 0.0.40
codegen_flags: <defaults>
</compile_context>

<pallas_src>
import functools

import jax
import jax.numpy as jnp
from jax.experimental import pallas as pl
from jax.experimental.pallas import tpu as pltpu


# --------------------------------------------------------------------------
# Kernels
# --------------------------------------------------------------------------
def _linear_kernel_single_k(x_ref, w_ref, b_ref, o_ref):
    """One (tm, tn) output tile; the whole K reduction is in this block.

    x_ref: (tm, K)  w_ref: (K, tn)  b_ref: (1, tn)  o_ref: (tm, tn)
    """
    acc = jnp.dot(x_ref[...], w_ref[...], preferred_element_type=jnp.float32)
    o_ref[...] = (acc + b_ref[...].astype(jnp.float32)).astype(o_ref.dtype)


def _linear_kernel_acc(x_ref, w_ref, b_ref, o_ref, acc_ref):
    """One (tm, tn) output tile, reducing over the K grid axis.

    acc_ref: (tm, tn) f32 VMEM scratch, persistent across the K axis.
    Bias is added exactly once, in the k == last epilogue.
    """
    k = pl.program_id(2)

    @pl.when(k == 0)
    def _():
        acc_ref[...] = jnp.zeros_like(acc_ref)

    acc_ref[...] += jnp.dot(
        x_ref[...], w_ref[...], preferred_element_type=jnp.float32
    )

    @pl.when(k == pl.num_programs(2) - 1)
    def _():
        out = acc_ref[...] + b_ref[...].astype(jnp.float32)
        o_ref[...] = out.astype(o_ref.dtype)


# --------------------------------------------------------------------------
# Helpers
# --------------------------------------------------------------------------
def _round_up(x: int, m: int) -> int:
    return ((x + m - 1) // m) * m


def _pick_tile(dim: int, preferred: int, unit: int) -> int:
    """Largest divisor of `dim` that is <= preferred and a multiple of `unit`.

    `dim` is always a multiple of `unit`, so `unit` itself is a valid fallback.
    """
    cand = min(preferred, dim)
    cand -= cand % unit
    while cand >= unit:
        if dim % cand == 0:
            return cand
        cand -= unit
    return dim


# --------------------------------------------------------------------------
# Forward pass
# --------------------------------------------------------------------------
@functools.partial(
    jax.jit,
    static_argnames=("out_dim", "preferred_tm", "preferred_tn", "preferred_tk",
                     "out_dtype"),
)
def image_encoder(
    image: jax.Array,
    weight_t: jax.Array,
    bias: jax.Array,
    *,
    out_dim: int | None = None,
    preferred_tm: int = 512,
    preferred_tn: int = 512,
    preferred_tk: int = 4096,   # fold the whole K reduction when it fits
    out_dtype=jnp.float32,
) -> jax.Array:
    """Pallas equivalent of nn.Linear forward.

    image:    [B, D_in]
    weight_t: [Kp, Np]  -- weight.T, ideally already cast to bf16 and padded to
                           (128, 128) multiples by init_image_encoder_params.
    bias:     [Np]      -- f32, padded to Np.
    out_dim:  logical D_out (static); defaults to weight_t.shape[1].
    returns   [B, out_dim] in `out_dtype`.
    """
    B, D_in = image.shape
    Kw, Nw = weight_t.shape
    if out_dim is None:
        out_dim = Nw
    assert Kw >= D_in, (Kw, D_in)
    assert Nw >= out_dim, (Nw, out_dim)

    w_dtype = weight_t.dtype
    w_itemsize = weight_t.dtype.itemsize
    out_itemsize = jnp.dtype(out_dtype).itemsize
    # Sub-32-bit dtypes pack along sublanes: bf16 needs a 16-row M unit.
    unit_m = 16 if w_itemsize < 4 else 8

    # Pad only to hardware tiles (unit_m, 128) -- never to the software tile.
    Bp = _round_up(B, unit_m)
    Kp = _round_up(Kw, 128)
    Np = _round_up(Nw, 128)

    # Cast activations to the weight dtype (bf16): halves the x HBM stream and
    # uses the native bf16 MXU rate; accumulation stays f32 inside the kernel.
    x = image.astype(w_dtype)
    if (Bp, Kp) != (B, D_in):
        x = jnp.pad(x, ((0, Bp - B), (0, Kp - D_in)))

    # Slow path only if the caller passed unpadded params (prefer padding once
    # at init -- see init_image_encoder_params).
    w = weight_t
    if w.shape != (Kp, Np):
        w = jnp.pad(w, ((0, Kp - Kw), (0, Np - Nw)))
    b2d = bias.reshape(1, -1)
    if b2d.shape != (1, Np):
        b2d = jnp.pad(b2d, ((0, 0), (0, Np - b2d.shape[1])))

    # Software tiles: divisors of the padded dims.
    tm = _pick_tile(Bp, preferred_tm, unit_m)
    tn = _pick_tile(Np, preferred_tn, 128)
    tk = _pick_tile(Kp, preferred_tk, 128)

    # v7x has 2 TensorCores sharded over "parallel" axes: make sure at least
    # one parallel axis has >= 2 blocks when the batch is small.
    if Bp // tm == 1 and Np // tn == 1 and Np >= 256:
        tn = _pick_tile(Np, max(Np // 2, 128), 128)

    gm, gn, gk = Bp // tm, Np // tn, Kp // tk
    single_block = (gm == 1 and gn == 1 and gk == 1)

    # Explicit scoped-VMEM budget: double-buffered x/W/bias/out tiles (+ acc).
    vmem_need = 2 * (
        tm * tk * w_itemsize
        + tk * tn * w_itemsize
        + tn * b2d.dtype.itemsize
        + tm * tn * out_itemsize
    )
    if gk > 1:
        vmem_need += tm * tn * 4
    vmem_limit = min(128 << 20, max(int(vmem_need * 1.5) + (2 << 20), 16 << 20))

    # Advisory cost estimate with the real refetch factors:
    #   x is re-read once per N tile, W once per M tile.
    cost = pl.CostEstimate(
        flops=2 * Bp * Np * Kp,
        transcendentals=0,
        bytes_accessed=int(
            gn * Bp * Kp * w_itemsize        # x stream (refetched gn times)
            + gm * Kp * Np * w_itemsize      # W stream (refetched gm times)
            + gm * Np * b2d.dtype.itemsize   # bias
            + Bp * Np * out_itemsize         # output writeback
        ),
    )

    if single_block:
        # Tiny problem: whole (padded) operands resident in VMEM, no grid.
        out = pl.pallas_call(
            _linear_kernel_single_k,
            out_shape=jax.ShapeDtypeStruct((Bp, Np), out_dtype),
            in_specs=[
                pl.BlockSpec(memory_space=pltpu.MemorySpace.VMEM),
                pl.BlockSpec(memory_space=pltpu.MemorySpace.VMEM),
                pl.BlockSpec(memory_space=pltpu.MemorySpace.VMEM),
            ],
            out_specs=pl.BlockSpec(memory_space=pltpu.MemorySpace.VMEM),
            compiler_params=pltpu.CompilerParams(vmem_limit_bytes=vmem_limit),
            cost_estimate=cost,
        )(x, w, b2d)
    elif gk == 1:
        # K fits in one step: no accumulator scratch, no pl.when machinery.
        out = pl.pallas_call(
            _linear_kernel_single_k,
            out_shape=jax.ShapeDtypeStruct((Bp, Np), out_dtype),
            grid=(gm, gn),
            in_specs=[
                pl.BlockSpec((tm, tk), lambda i, j: (i, 0)),   # x tile
                pl.BlockSpec((tk, tn), lambda i, j: (0, j)),   # W_t tile
                pl.BlockSpec((1, tn), lambda i, j: (0, j)),    # bias tile
            ],
            out_specs=pl.BlockSpec((tm, tn), lambda i, j: (i, j)),
            compiler_params=pltpu.CompilerParams(
                dimension_semantics=("parallel", "parallel"),
                vmem_limit_bytes=vmem_limit,
            ),
            cost_estimate=cost,
        )(x, w, b2d)
    else:
        out = pl.pallas_call(
            _linear_kernel_acc,
            out_shape=jax.ShapeDtypeStruct((Bp, Np), out_dtype),
            grid=(gm, gn, gk),
            in_specs=[
                pl.BlockSpec((tm, tk), lambda i, j, k: (i, k)),   # x tile
                pl.BlockSpec((tk, tn), lambda i, j, k: (k, j)),   # W_t tile
                pl.BlockSpec((1, tn), lambda i, j, k: (0, j)),    # bias tile
            ],
            out_specs=pl.BlockSpec((tm, tn), lambda i, j, k: (i, j)),
            scratch_shapes=[pltpu.VMEM((tm, tn), jnp.float32)],
            compiler_params=pltpu.CompilerParams(
                dimension_semantics=("parallel", "parallel", "arbitrary"),
                vmem_limit_bytes=vmem_limit,
            ),
            cost_estimate=cost,
        )(x, w, b2d)

    if (Bp, Np) != (B, out_dim):
        out = out[:B, :out_dim]
    return out


# --------------------------------------------------------------------------
# Parameter init (padding + transpose + dtype cast done ONCE, not per call)
# --------------------------------------------------------------------------
def init_image_encoder_params(key, in_dim: int, out_dim: int,
                              dtype=jnp.bfloat16):
    """Matches nn.Linear default init U(-1/sqrt(fan_in), 1/sqrt(fan_in)).

    Returns (weight_t, bias) where weight_t is stored transposed as
    [Kp, Np] = [round_up(in_dim,128), round_up(out_dim,128)] in `dtype`
    (bf16 by default) and bias is f32 padded to Np, so the forward pass never
    transposes or pads the weight in HBM per call.
    """
    k_w, k_b = jax.random.split(key)
    bound = 1.0 / (in_dim ** 0.5)
    # Sample in torch convention [out, in], then transpose/cast/pad once.
    weight = jax.random.uniform(k_w, (out_dim, in_dim), jnp.float32,
                                -bound, bound)
    bias = jax.random.uniform(k_b, (out_dim,), jnp.float32, -bound, bound)
    kp = _round_up(in_dim, 128)
    np_ = _round_up(out_dim, 128)
    weight_t = jnp.pad(weight.T.astype(dtype),
                       ((0, kp - in_dim), (0, np_ - out_dim)))
    bias_p = jnp.pad(bias, ((0, np_ - out_dim),))
    return weight_t, bias_p


# --------------------------------------------------------------------------
# Demo / correctness check
# --------------------------------------------------------------------------
if __name__ == "__main__":
    key = jax.random.PRNGKey(0)
    k_x, k_p, k_x2, k_p2 = jax.random.split(key, 4)

    # Small shapes consistent with the module: batch=8, D_in=32, D_out=16.
    batch, img_input_dim, img_embedding_dim = 8, 32, 16
    image = jax.random.normal(k_x, (batch, img_input_dim), dtype=jnp.float32)
    weight_t, bias = init_image_encoder_params(
        k_p, img_input_dim, img_embedding_dim)

    out = jax.block_until_ready(
        image_encoder(image, weight_t, bias, out_dim=img_embedding_dim))
    assert out.shape == (batch, img_embedding_dim)

    # Reference with the same bf16-rounded operands, f32 accumulation.
    w_ref = weight_t.astype(jnp.float32)[:img_input_dim, :img_embedding_dim]
    x_ref = image.astype(jnp.bfloat16).astype(jnp.float32)
    ref = jnp.dot(x_ref, w_ref, precision=jax.lax.Precision.HIGHEST) \
        + bias[:img_embedding_dim]
    assert jnp.allclose(out, ref, atol=2e-3, rtol=2e-3)

    # Larger test that exercises the multi-tile K-accumulator path and
    # >= 2 blocks along the parallel axes (grid = (2, 2, 3)).
    B2, D_in2, D_out2 = 512, 384, 256
    image2 = jax.random.normal(k_x2, (B2, D_in2), dtype=jnp.float32)
    weight_t2, bias2 = init_image_encoder_params(k_p2, D_in2, D_out2)
    out2 = jax.block_until_ready(
        image_encoder(image2, weight_t2, bias2, out_dim=D_out2,
                      preferred_tm=256, preferred_tn=128, preferred_tk=128))
    w2_ref = weight_t2.astype(jnp.float32)[:D_in2, :D_out2]
    x2_ref = image2.astype(jnp.bfloat16).astype(jnp.float32)
    ref2 = jnp.dot(x2_ref, w2_ref, precision=jax.lax.Precision.HIGHEST) \
        + bias2[:D_out2]
    assert out2.shape == (B2, D_out2)
    assert jnp.allclose(out2, ref2, atol=5e-3, rtol=5e-3)

    print("KERNEL_OK")
</pallas_src>

<mosaic_0001>
module attributes {stable_mosaic.version = 11 : i64} {
  func.func @_linear_kernel_single_k(%arg0: memref<16x128xbf16, #tpu.memory_space<vmem>>, %arg1: memref<128x128xbf16, #tpu.memory_space<vmem>>, %arg2: memref<1x128xf32, #tpu.memory_space<vmem>>, %arg3: memref<16x128xf32, #tpu.memory_space<vmem>>) attributes {dimension_semantics = [], scalar_prefetch = 0 : i64, scratch_operands = 0 : i64, tpu.core_type = #tpu.core_type<tc>} {
    %c0 = arith.constant 0 : index
    %c0_0 = arith.constant 0 : index
    %0 = vector.load %arg0[%c0, %c0_0] : memref<16x128xbf16, #tpu.memory_space<vmem>>, vector<16x128xbf16>
    %c0_1 = arith.constant 0 : index
    %c0_2 = arith.constant 0 : index
    %1 = vector.load %arg1[%c0_1, %c0_2] : memref<128x128xbf16, #tpu.memory_space<vmem>>, vector<128x128xbf16>
    %cst = arith.constant dense<0.000000e+00> : vector<16x128xf32>
    %2 = tpu.matmul %0, %1, %cst {dimension_numbers = #tpu.dot_dimension_numbers<[1], [0], [0], [1], [0, 0, 1, 1], [], []>} : vector<16x128xbf16>, vector<128x128xbf16>, vector<16x128xf32> -> vector<16x128xf32>
    %c0_3 = arith.constant 0 : index
    %c0_4 = arith.constant 0 : index
    %3 = vector.load %arg2[%c0_3, %c0_4] : memref<1x128xf32, #tpu.memory_space<vmem>>, vector<1x128xf32>
    %4 = vector.broadcast %3 : vector<1x128xf32> to vector<16x128xf32>
    %5 = arith.addf %2, %4 : vector<16x128xf32>
    %c0_5 = arith.constant 0 : index
    %c0_6 = arith.constant 0 : index
    %6 = vector.load %arg3[%c0_5, %c0_6] : memref<16x128xf32, #tpu.memory_space<vmem>>, vector<16x128xf32>
    tpu.vector_store %arg3[%c0_5, %c0_6], %5 {strides = array<i32>} : memref<16x128xf32, #tpu.memory_space<vmem>>, vector<16x128xf32>,
    return
  }
}

</mosaic_0001>

<bundles_post_ra>
// kernel: image_encoder.1
= control target key start
LH: loop header
LB: loop body
LE: loop exit
PB: predicated region body
PF: predicated region fallthrough
CT: control target
= control target key end

     0   :  { %8 = vsyncpa [#allocation3], 0  ;;  %s233_s12 = smov [#allocation2]   ;;  %s282_s0 = inlined_call_operand.vmem [shape: bf16[16,128], index: 0, kind: input, shape index: {}]   ;;  %s283_s1 = inlined_call_operand.hbm [shape: bf16[128,128], index: 1, kind: input, shape index: {}]   ;;  %s284_s2 = inlined_call_operand.vmem [shape: f32[1,128], index: 2, kind: input, shape index: {}]   ;;  %s285_s3 = inlined_call_operand.vmem [shape: f32[16,128], index: 3, kind: output, shape index: {}]  }
   0x1   :  { %s16_s13 = sshll.u32 %s233_s12, 4  ;;  %s209_s16 = scalar_lea.hbm %s283_s1, 1024  ;;  %s17_s13 = int_to_ptr.vmem [resolvable:$true] %s16_s13 }
   0x2   :  { %p210_p0 = scmp.ne.s32.totalorder %s283_s1, %s209_s16  ;;  %p213_p1 = scmp.lt.u32.totalorder %s209_s16, %s283_s1 }
   0x4   :  { %p215_p2 = pnand %p213_p1, %p210_p0 }
   0x6   :  { %218 = shalt.err (!%p215_p2)
}
   0x7   :  { %s219_s21 = scalar_lea.vmem %s17_s13, 1024  ;;  %p224_p4 = scmp.lt.s32.totalorder %s17_s13, %s17_s13 }
   0x8   :  { %p220_p3 = scmp.ne.s32.totalorder %s17_s13, %s219_s21  ;;  %p225_p5 = scmp.lt.s32.totalorder %s219_s21, %s219_s21 }
   0xa   :  { %p226_p6 = por %p225_p5, %p224_p4 }
   0xc   :  { %p227_p7 = pnand %p226_p6, %p220_p3 }
   0xe   :  { %230 = shalt.err (!%p227_p7)
}
   0xf   :  { %s234_s22 = smov 64   ;;  %s235_s23 = smov 4  }
  0x10   :  { %22 = dma.hbm_to_vmem [thread:$0]  %s283_s1, 1024, %s17_s13, [#allocation3], %s234_s22, %s234_s22, %s235_s23  }
  0x11   :  { %231 = dma.done.wait [#allocation3], 1024  }
  0x12   :  { %232 = vsyncadd [#allocation3], 4294966272  ;;  %v236_v0 = vmov 0.0   ;;  %vm237_vm0 = vmmov 0   ;;  %v200_v1 = vld [vmem:[#allocation2] sm:$0xff]   ;;  %v201_v2 = vld [vmem:[#allocation2 + $0x8] sm:$0xff]  }
  0x13   :  { %175 = vmatprep.subr.bf16.mxu0 %v236_v0  ;;  %191 = vmatprep.mubr.msk.bf16.mxu0 %vm237_vm0, %v236_v0  ;;  %v202_v3 = vld [vmem:[#allocation2 + $0x10] sm:$0xff]   ;;  %v203_v4 = vld [vmem:[#allocation2 + $0x18] sm:$0xff]   ;;  %v204_v5 = vld [vmem:[#allocation2 + $0x20] sm:$0xff]  }
  0x14   :  { %176 = vmatpush3.bf16.msra.mxu0 %v200_v1  ;;  %v205_v6 = vld [vmem:[#allocation2 + $0x28] sm:$0xff]   ;;  %v206_v7 = vld [vmem:[#allocation2 + $0x30] sm:$0xff]   ;;  %v207_v8 = vld [vmem:[#allocation2 + $0x38] sm:$0xff]  }
  0x15   :  { %177 = vmatprep.subr.bf16.mxu0 %v236_v0  ;;  %v208_v9 = vld [vmem:[%s282_s0] sm:$0xff]  }
  0x16   :  { %v156_v10 = vld [vmem:[%s284_s2] ss:$0 sm:$0xff] }
  0x18   :  { %178 = vmatpush3.bf16.msra.mxu0 %v201_v2 }
  0x19   :  { %179 = vmatprep.subr.bf16.mxu0 %v236_v0 }
  0x1c   :  { %180 = vmatpush3.bf16.msra.mxu0 %v202_v3 }
  0x1d   :  { %181 = vmatprep.subr.bf16.mxu0 %v236_v0 }
  0x20   :  { %182 = vmatpush3.bf16.msra.mxu0 %v203_v4 }
  0x21   :  { %183 = vmatprep.subr.bf16.mxu0 %v236_v0 }
  0x24   :  { %184 = vmatpush3.bf16.msra.mxu0 %v204_v5 }
  0x25   :  { %185 = vmatprep.subr.bf16.mxu0 %v236_v0 }
  0x28   :  { %186 = vmatpush3.bf16.msra.mxu0 %v205_v6 }
  0x29   :  { %187 = vmatprep.subr.bf16.mxu0 %v236_v0 }
  0x2c   :  { %188 = vmatpush3.bf16.msra.mxu0 %v206_v7 }
  0x2d   :  { %189 = vmatprep.subr.bf16.mxu0 %v236_v0 }
  0x30   :  { %190 = vmatpush3.bf16.msra.mxu0 %v207_v8 }
  0x33   :  { %192 = vmatmul.mubr.bf16.vlgmr.msra.gmra.mrb[0].mxu0 %v208_v9 }
 0x106   :  { %v142_v11 = vpop.f32.mrb[0].mxu0 }
 0x107   :  { %v143_v12 = vadd.f32 %v156_v10, %v142_v11  ;;  %v193_v13 = vpop.f32.mrb[1].mxu0 }
 0x108   :  { %v145_v14 = vpop.f32.mrb[2].mxu0 }
 0x109   :  { %149 = vst [vmem:[%s285_s3] sm:$0xff] %v143_v12  ;;  %v146_v15 = vadd.f32 %v156_v10, %v145_v14  ;;  %v194_v16 = vpop.f32.mrb[3].mxu0 }
 0x10b   :  { %150 = vst [vmem:[%s285_s3 + $0x8] sm:$0xff] %v146_v15 }
 0x10c   :  { %155 = vsyncpa [#allocation3], 1 }

</bundles_post_ra>
